<compile_context>
chip_gen: v7x
topology: tpu7x:2x2x1
jax: 0.10.0
libtpu: 0.0.40
codegen_flags: <defaults>
</compile_context>

<pallas_src>
import jax
import jax.numpy as jnp
from jax.experimental import pallas as pl
from jax.experimental.pallas import tpu as pltpu


def _rup(v, m):
    return ((v + m - 1) // m) * m


def _lora_kernel(x_ref, a_ref, b_ref, o_ref):
    # x_ref : (TM, in_dim)    tile of flattened input rows (last block ragged)
    # a_ref : (in_dim, rank)  pre-transposed, pre-scaled LoRA A (grid-constant)
    # b_ref : (rank, out_dim) pre-transposed LoRA B (grid-constant)
    xa = jnp.dot(x_ref[...], a_ref[...], preferred_element_type=jnp.float32)
    xa = xa.astype(b_ref.dtype)          # no-op for f32; one rounding for bf16
    out = jnp.dot(xa, b_ref[...], preferred_element_type=jnp.float32)
    o_ref[...] = out.astype(o_ref.dtype)


def _lora_fused_kernel(x_ref, a_ref, b_ref, base_ref, o_ref):
    # Fused variant: writes base + lora directly, saving a full HBM pass over
    # the (M, out_dim) output downstream.
    xa = jnp.dot(x_ref[...], a_ref[...], preferred_element_type=jnp.float32)
    xa = xa.astype(b_ref.dtype)
    out = jnp.dot(xa, b_ref[...], preferred_element_type=jnp.float32)
    o_ref[...] = (out + base_ref[...].astype(jnp.float32)).astype(o_ref.dtype)


def lora_forward(x, lora_A, lora_B, *, alpha, rank, base=None):
    """x: (..., in_dim) -> (..., out_dim); matches PyTorch LoRALayer.forward.

    If `base` (..., out_dim) is given, returns base + lora (fused epilogue add).
    """
    scaling = float(alpha) / float(rank)
    in_dim = x.shape[-1]
    out_dim = lora_B.shape[0]
    lead_shape = x.shape[:-1]

    x2d = x.reshape(-1, in_dim)
    M = x2d.shape[0]
    dtype = x.dtype
    dtype_bytes = jnp.dtype(dtype).itemsize
    sublane = (8 * 4) // dtype_bytes                   # 8 for f32, 16 for bf16

    # Fold scaling into the tiny constant A; pre-transpose once in the
    # wrapper (layout plumbing on a small constant, not the streamed x).
    a_t = (lora_A.T * scaling).astype(dtype)           # (in_dim, rank)
    b_t = lora_B.T.astype(dtype)                       # (rank, out_dim)
    # TODO(synk): optionally cast a_t/b_t (and the x tile in-kernel) to bf16
    # on v5e if precision allows; kept native dtype to preserve numerics.

    # Real VMEM footprint of the (double-buffered) constant weight blocks:
    # lane dim pads to 128, sublane dim pads to the dtype sublane tile.
    a_vmem = _rup(in_dim, sublane) * _rup(rank, 128) * dtype_bytes
    b_vmem = _rup(rank, sublane) * _rup(out_dim, 128) * dtype_bytes
    weights_vmem = 2 * (a_vmem + b_vmem)               # 2x: double-buffered

    # Generation-aware budgets (v7x: 64 MiB/TC, v5e/v6e: 128 MiB).
    try:
        vmem_capacity = int(pltpu.get_tpu_info().vmem_capacity_bytes)
    except Exception:
        vmem_capacity = 64 << 20                       # conservative fallback
    small_vmem = vmem_capacity <= (64 << 20)
    tile_budget = (28 << 20) if small_vmem else (48 << 20)
    vmem_cap = (40 << 20) if small_vmem else (96 << 20)

    n_out_streams = 2 if base is not None else 1       # out (+ base)
    row_bytes = dtype_bytes * (_rup(in_dim, 128)
                               + n_out_streams * _rup(out_dim, 128))
    per_row = 2 * row_bytes                            # double-buffered tiles
    avail = max(tile_budget - weights_vmem, per_row * 8)
    tm = min(1024, max(8, avail // per_row))
    tm = max(8, (tm // 8) * 8)                         # sublane multiple
    tm = min(tm, _rup(M, 8))                           # don't exceed M

    # No M padding: Pallas clips the ragged last block (its garbage rows are
    # never stored to HBM), and no out_dim padding: the output block's last
    # dim equals the full array dim so it is a legal (possibly masked) store.
    grid = (pl.cdiv(M, tm),)

    # f32 intermediates (xa tile + f32 out tile) transiently live in VMEM too.
    inter_vmem = tm * (_rup(rank, 128) + _rup(out_dim, 128)) * 4
    footprint = per_row * tm + weights_vmem + inter_vmem
    vmem_limit = min(max(int(footprint * 1.25) + (8 << 20), 32 << 20), vmem_cap)

    flops = 2 * M * in_dim * rank + 2 * M * rank * out_dim
    bytes_accessed = (x2d.size + n_out_streams * M * out_dim
                      + a_t.size + b_t.size) * dtype_bytes

    x_spec = pl.BlockSpec((tm, in_dim), lambda i: (i, 0))
    a_spec = pl.BlockSpec((in_dim, rank), lambda i: (0, 0))
    b_spec = pl.BlockSpec((rank, out_dim), lambda i: (0, 0))
    o_spec = pl.BlockSpec((tm, out_dim), lambda i: (i, 0))

    if base is not None:
        base2d = base.reshape(-1, out_dim).astype(dtype)
        kernel = _lora_fused_kernel
        in_specs = [x_spec, a_spec, b_spec,
                    pl.BlockSpec((tm, out_dim), lambda i: (i, 0))]
        operands = (x2d, a_t, b_t, base2d)
    else:
        kernel = _lora_kernel
        in_specs = [x_spec, a_spec, b_spec]
        operands = (x2d, a_t, b_t)

    out2d = pl.pallas_call(
        kernel,
        out_shape=jax.ShapeDtypeStruct((M, out_dim), dtype),
        grid_spec=pltpu.PrefetchScalarGridSpec(
            num_scalar_prefetch=0,
            grid=grid,
            in_specs=in_specs,
            out_specs=o_spec,
        ),
        compiler_params=pltpu.CompilerParams(
            dimension_semantics=("parallel",),
            vmem_limit_bytes=vmem_limit,
        ),
        cost_estimate=pl.CostEstimate(
            flops=flops, transcendentals=0, bytes_accessed=int(bytes_accessed)),
    )(*operands)

    return out2d.reshape(*lead_shape, out_dim)


if __name__ == "__main__":
    key = jax.random.PRNGKey(0)
    kx, ka, kb, kc = jax.random.split(key, 4)

    batch, seq, in_dim, out_dim, rank, alpha = 2, 8, 32, 32, 8, 16

    x = jax.random.normal(kx, (batch, seq, in_dim), dtype=jnp.float32)

    # Deterministic parameter init mirroring the PyTorch module:
    #   lora_A = randn(rank, in_dim) * 0.02 ; lora_B = zeros(out_dim, rank)
    lora_A = jax.random.normal(ka, (rank, in_dim), dtype=jnp.float32) * 0.02
    lora_B = jnp.zeros((out_dim, rank), dtype=jnp.float32)

    out = lora_forward(x, lora_A, lora_B, alpha=alpha, rank=rank)
    out = jax.block_until_ready(out)
    ref = (x @ lora_A.T @ lora_B.T) * (alpha / rank)
    assert out.shape == (batch, seq, out_dim)
    assert jnp.allclose(out, ref, atol=1e-5, rtol=1e-5)

    # Non-trivial numerical check (random B, since zero-init B gives all-zero
    # output): same forward semantics, different weights.
    lora_B2 = jax.random.normal(kb, (out_dim, rank), dtype=jnp.float32) * 0.1
    out2 = jax.block_until_ready(
        lora_forward(x, lora_A, lora_B2, alpha=alpha, rank=rank))
    ref2 = (x @ lora_A.T @ lora_B2.T) * (alpha / rank)
    assert jnp.allclose(out2, ref2, atol=1e-5, rtol=1e-5)

    # Fused-add variant (base projection output added in the kernel epilogue).
    base = jax.random.normal(kc, (batch, seq, out_dim), dtype=jnp.float32)
    out3 = jax.block_until_ready(
        lora_forward(x, lora_A, lora_B2, alpha=alpha, rank=rank, base=base))
    assert jnp.allclose(out3, base + ref2, atol=1e-5, rtol=1e-5)

    print("KERNEL_OK")
</pallas_src>

<mosaic_0001>
module attributes {stable_mosaic.version = 11 : i64} {
  func.func @_lora_kernel(%arg0: i32, %arg1: memref<16x32xf32, #tpu.memory_space<vmem>>, %arg2: memref<32x8xf32, #tpu.memory_space<vmem>>, %arg3: memref<8x32xf32, #tpu.memory_space<vmem>>, %arg4: memref<16x32xf32, #tpu.memory_space<vmem>>) attributes {dimension_semantics = [#tpu.dimension_semantics<parallel>], iteration_bounds = array<i64: 1>, scalar_prefetch = 0 : i64, scratch_operands = 0 : i64, tpu.core_type = #tpu.core_type<tc>, window_params = [{transform_indices = @transform_0, window_bounds = array<i64: 16, 32>}, {pipeline_mode = #tpu.pipeline_mode<synchronous>, transform_indices = @transform_1, window_bounds = array<i64: 32, 8>}, {pipeline_mode = #tpu.pipeline_mode<synchronous>, transform_indices = @transform_2, window_bounds = array<i64: 8, 32>}, {transform_indices = @transform_3, window_bounds = array<i64: 16, 32>}]} {
    %c0 = arith.constant 0 : index
    %c0_0 = arith.constant 0 : index
    %0 = vector.load %arg1[%c0, %c0_0] : memref<16x32xf32, #tpu.memory_space<vmem>>, vector<16x32xf32>
    %c0_1 = arith.constant 0 : index
    %c0_2 = arith.constant 0 : index
    %1 = vector.load %arg2[%c0_1, %c0_2] : memref<32x8xf32, #tpu.memory_space<vmem>>, vector<32x8xf32>
    %cst = arith.constant dense<0.000000e+00> : vector<16x8xf32>
    %2 = tpu.matmul %0, %1, %cst {dimension_numbers = #tpu.dot_dimension_numbers<[1], [0], [0], [1], [0, 0, 1, 1], [], []>} : vector<16x32xf32>, vector<32x8xf32>, vector<16x8xf32> -> vector<16x8xf32>
    %c0_3 = arith.constant 0 : index
    %c0_4 = arith.constant 0 : index
    %3 = vector.load %arg3[%c0_3, %c0_4] : memref<8x32xf32, #tpu.memory_space<vmem>>, vector<8x32xf32>
    %cst_5 = arith.constant dense<0.000000e+00> : vector<16x32xf32>
    %4 = tpu.matmul %2, %3, %cst_5 {dimension_numbers = #tpu.dot_dimension_numbers<[1], [0], [0], [1], [0, 0, 1, 1], [], []>} : vector<16x8xf32>, vector<8x32xf32>, vector<16x32xf32> -> vector<16x32xf32>
    %c0_6 = arith.constant 0 : index
    %c0_7 = arith.constant 0 : index
    %5 = vector.load %arg4[%c0_6, %c0_7] : memref<16x32xf32, #tpu.memory_space<vmem>>, vector<16x32xf32>
    tpu.vector_store %arg4[%c0_6, %c0_7], %4 {strides = array<i32>} : memref<16x32xf32, #tpu.memory_space<vmem>>, vector<16x32xf32>,
    return
  }
  func.func @transform_0(%arg0: i32) -> (i32, i32) {
    %c0_i32 = arith.constant 0 : i32
    %c0_i32_0 = arith.constant 0 : i32
    return %arg0, %c0_i32 : i32, i32
  }
  func.func @transform_1(%arg0: i32) -> (i32, i32) {
    %c0_i32 = arith.constant 0 : i32
    %c0_i32_0 = arith.constant 0 : i32
    %c0_i32_1 = arith.constant 0 : i32
    return %c0_i32, %c0_i32_0 : i32, i32
  }
  func.func @transform_2(%arg0: i32) -> (i32, i32) {
    %c0_i32 = arith.constant 0 : i32
    %c0_i32_0 = arith.constant 0 : i32
    %c0_i32_1 = arith.constant 0 : i32
    return %c0_i32, %c0_i32_0 : i32, i32
  }
  func.func @transform_3(%arg0: i32) -> (i32, i32) {
    %c0_i32 = arith.constant 0 : i32
    %c0_i32_0 = arith.constant 0 : i32
    return %arg0, %c0_i32 : i32, i32
  }
}

</mosaic_0001>

<bundles_post_ra>
// kernel: tpu_custom_call.1
= control target key start
LH: loop header
LB: loop body
LE: loop exit
PB: predicated region body
PF: predicated region fallthrough
CT: control target
= control target key end

     0   :  { %vm21_vm0 = vcmask 261120   ;;  %s328_s0 = inlined_call_operand.vmem [shape: f32[16,32], index: 0, kind: input, shape index: {}]   ;;  %s329_s1 = inlined_call_operand.vmem [shape: f32[32,8], index: 1, kind: input, shape index: {}]   ;;  %s330_s2 = inlined_call_operand.vmem [shape: f32[8,32], index: 2, kind: input, shape index: {}]   ;;  %s331_s3 = inlined_call_operand.hbm [shape: f32[16,32], index: 3, kind: output, shape index: {}]  }
   0x1   :  { %v17_v0 = vld [vmem:[%s329_s1] sm:$0xff]  ;;  %v18_v1 = vld [vmem:[%s329_s1 + $0x8] sm:$0xff]  ;;  %v19_v2 = vld [vmem:[%s329_s1 + $0x10] sm:$0xff] }
   0x2   :  { %v233_v3 = vpack.c.bf16 %v18_v1, %v17_v0  ;;  %v20_v4 = vld [vmem:[%s329_s1 + $0x18] sm:$0xff]  ;;  %v15_v5 = vld [vmem:[%s328_s0] sm:$0xff] }
   0x3   :  { %v237_v6 = vpack.c.bf16 %v20_v4, %v19_v2  ;;  %225 = vmatprep.mubr.msk.f32.mxu0 %vm21_vm0, %v15_v5 }
   0x4   :  { %8 = vsyncpa [#allocation3], 0  ;;  %234 = vmatprep.subr.bf16.mxu0 %v233_v3  ;;  %v16_v7 = vld [vmem:[%s328_s0 + $0x8] sm:$0xff]  ;;  %v103_v8 = vld [vmem:[%s330_s2] sm:$0xff]  ;;  %vm104_vm1 = vcmask 64512   ;;  %s268_s25 = smov [#allocation2]  }
   0x5   :  { %236 = vmatpush3.bf16.msra.mxu0 %v233_v3  ;;  %228 = vmatprep.subr.mxu1 %v103_v8  ;;  %s193_s26 = sshll.u32 %s268_s25, 4  ;;  %s194_s26 = int_to_ptr.vmem [resolvable:$true] %s193_s26 }
   0x6   :  { %238 = vmatprep.subr.bf16.mxu0 %v237_v6  ;;  %229 = vmatpush3.msra.mxu1 %v103_v8  ;;  %s244_s0 = scalar_lea.vmem %s194_s26, 256  ;;  %p249_p1 = scmp.lt.s32.totalorder %s194_s26, %s194_s26 }
   0x7   :  { %p245_p0 = scmp.ne.s32.totalorder %s194_s26, %s244_s0  ;;  %p250_p2 = scmp.lt.s32.totalorder %s244_s0, %s244_s0 }
   0x9   :  { %240 = vmatpush3.bf16.msra.mxu0 %v237_v6  ;;  %p251_p3 = por %p250_p2, %p249_p1 }
   0xb   :  { %p252_p4 = pnand %p251_p3, %p245_p0 }
   0xc   :  { %226 = vmatmul.mubr.msk.f32.vlgmr.msra.gmra.mrb[0].mxu0 %vm21_vm0, %v16_v7 }
  0xdf   :  { %v227_v9 = vpop.f32.mrb[0].mxu0 }
  0xe0   :  { %v94_v10 = vpop.f32.mrb[1].mxu0 }
  0xe1   :  { %230 = vmatprep.mubr.msk.f32.mxu1 %vm104_vm1, %v94_v10 }
  0xe2   :  { %231 = vmatmul.mubr.msk.f32.vlgmr.msra.gmra.mrb[0].mxu1 %vm104_vm1, %v227_v9 }
 0x1b5   :  { %v232_v11 = vpop.f32.mrb[0].mxu1 }
 0x1b6   :  { %187 = vst.msk [vmem:[#allocation2 + $0x8] sm:$0xff] %vm21_vm0, %v232_v11  ;;  %v177_v12 = vpop.f32.mrb[1].mxu1 }
 0x1b7   :  { %186 = vst.msk [vmem:[#allocation2] sm:$0xff] %vm21_vm0, %v177_v12 }
 0x1b8   :  { %255 = shalt.err (!%p252_p4)
}
 0x1b9   :  { %s256_s28 = scalar_lea.hbm %s331_s3, 256 }
 0x1ba   :  { %p257_p5 = scmp.ne.s32.totalorder %s331_s3, %s256_s28  ;;  %p260_p6 = scmp.lt.u32.totalorder %s256_s28, %s331_s3 }
 0x1bc   :  { %p262_p7 = pnand %p260_p6, %p257_p5 }
 0x1be   :  { %265 = shalt.err (!%p262_p7)
}
 0x1bf   :  { %s269_s6 = smov 128   ;;  %s270_s7 = smov 8  }
 0x1c0   :  { %199 = dma.vmem_to_hbm [thread:$0]  %s194_s26, 256, %s331_s3, [#allocation3], %s269_s6, %s269_s6, %s270_s7  }
 0x1c1   :  { %266 = dma.done.wait [#allocation3], 256  }
 0x1c2   :  { %267 = vsyncadd [#allocation3], 4294967040 }
 0x1c3   :  { %203 = vsyncpa [#allocation3], 1 }

</bundles_post_ra>
